<compile_context>
chip_gen: v7x
topology: tpu7x:2x2x1
jax: 0.10.0
libtpu: 0.0.40
codegen_flags: <defaults>
</compile_context>

<pallas_src>
import numpy as np
import jax
import jax.numpy as jnp
from jax.experimental import pallas as pl
from jax.experimental.pallas import tpu as pltpu


def decoder_kernel(x_ref, w_ref, b_ref, o_ref):
    """One grid step: BB batch elements x one group-block.

    x_ref: [BB, CB, T]   activations, native NCW layout (time on lanes)
    w_ref: [2*Mb, CB]    stacked block-diagonal deconv taps, bf16
                         rows [0, Mb)   : taps stride..S-1 ("v2", current frame)
                         rows [Mb, 2Mb) : taps 0..stride-1 ("v1", next frame)
    b_ref: [Mb, 1]       per-(group, phase) bias, f32
    o_ref: [BB, Mb, T]   strided-phase output (time on lanes), f32
    """
    BB, Mb, T = o_ref.shape

    w = w_ref[...]                         # bf16, reused across the BB loop
    b = b_ref[...]                         # f32
    # Frame T-1 has no "next input frame" contribution: mask the wrapped lane.
    last_lane_mask = jax.lax.broadcasted_iota(jnp.int32, (Mb, T), 1) < (T - 1)

    for i in range(BB):                    # static unroll, BB <= 8
        x_bf = x_ref[i].astype(jnp.bfloat16)                        # [CB, T]
        # One MXU matmul per batch element covering all groups of this block.
        v = jnp.dot(w, x_bf, preferred_element_type=jnp.float32)    # [2*Mb, T]
        v2 = v[:Mb, :]       # frame q  -> output frame q
        v1 = v[Mb:, :]       # frame q  -> output frame q-1
        # Shift v1 one frame left along the lane/time axis (XLU roll, review #2).
        # shift = T-1 == -1 (mod T); the wrapped last lane is masked to zero,
        # which also makes T == 1 trivially correct.
        v1_next = pltpu.roll(v1, shift=T - 1, axis=1)
        v1_next = jnp.where(last_lane_mask, v1_next, 0.0)
        # Single full-tile, lane-dense store per batch element (bias fused).
        o_ref[i] = (v2 + v1_next + b).astype(o_ref.dtype)


def adaptive_decoder_1d(x, weight, bias, *, n_sources, freq_res, sample_res):
    """x: [B, n_sources*freq_res, T] (f32 or bf16, native PyTorch NCW layout)
       weight: [n_sources*freq_res, 1, sample_res] (ConvTranspose1d layout)
       bias:   [n_sources]
       returns [B, n_sources, T*(sample_res//2) - 1] float32"""
    B, C, T = x.shape
    G, F, S = n_sources, freq_res, sample_res
    assert C == G * F
    # TODO(synk): odd sample_res (kernel != 2*stride) needs a third overlap term.
    assert S % 2 == 0, "kernel assumes even sample_res (kernel_size == 2*stride)"
    stride = S // 2
    L_out = T * stride - 1

    if x.dtype not in (jnp.float32, jnp.bfloat16):
        x = x.astype(jnp.float32)
    x_isz = jnp.dtype(x.dtype).itemsize

    # ---- group blocking (review #5): block-diag weight stays inside one MXU tile.
    GB = 1
    for cand in range(1, G + 1):
        if G % cand == 0 and cand * F <= 128 and cand * S <= 128:
            GB = cand
    nG = G // GB
    CB = GB * F            # channels per group-block
    Mb = GB * stride       # output phase-rows per group-block
    # If blocking would create non-8-aligned second-minor block dims, fall back
    # to a single dense block (correctness/lowering over the MXU-waste concern).
    if nG > 1 and (CB % 8 != 0 or Mb % 8 != 0):
        GB, nG, CB, Mb = G, 1, G * F, G * stride

    # ---- weights: stacked block-diagonal [v2 taps ; v1 taps], built once.
    w3 = weight.astype(jnp.float32).reshape(G, F, S)
    w2 = jnp.transpose(w3[:, :, stride:], (0, 2, 1))   # (G, stride, F) taps stride..S-1
    w1 = jnp.transpose(w3[:, :, :stride], (0, 2, 1))   # (G, stride, F) taps 0..stride-1
    eye = jnp.eye(GB, dtype=jnp.float32)

    def block_diag(wp):                                # (G, stride, F) -> (nG, Mb, CB)
        wp = wp.reshape(nG, GB, stride, F)
        out = jnp.einsum('gh,ngsf->ngshf', eye, wp)    # zero off-group blocks
        return out.reshape(nG, Mb, CB)

    w_stack = jnp.concatenate([block_diag(w2), block_diag(w1)], axis=1)
    w_stack = w_stack.astype(jnp.bfloat16)             # (nG, 2*Mb, CB)

    b_mat = jnp.broadcast_to(
        bias.astype(jnp.float32).reshape(nG, GB, 1, 1),
        (nG, GB, stride, 1)).reshape(nG, Mb, 1)

    # ---- batch blocking (review #4): amortize the ~0.35us/step overhead while
    # keeping the double-buffered working set within a budget that is safe on
    # v5e/v6e and well under v7x's 64 MiB per-TC VMEM (review #8).
    per_b_blk = CB * T * x_isz + Mb * T * 4            # x block + out block, per batch elt
    per_b_live = 4 * Mb * T * 4                        # in-register v/v1/v2 intermediates
    fixed = 2 * (2 * Mb * CB * 2 + Mb * 4)             # weight + bias blocks
    budget = 24 * 1024 * 1024
    BB = 1
    for cand in range(1, min(B, 8) + 1):
        if B % cand == 0 and (2 * cand * per_b_blk + cand * per_b_live + fixed) <= budget:
            BB = cand
    nB = B // BB

    need = 2 * BB * per_b_blk + BB * per_b_live + fixed
    vmem_limit = int(min(64 * 1024 * 1024,
                         max(16 * 1024 * 1024, int(need * 1.5) + (4 << 20))))
    # TODO(synk): for very long signals (full-T block > budget with BB=1), tile
    #             T on a grid axis with a 1-frame halo carried across tiles.

    bytes_accessed = int(B * C * T * x_isz + w_stack.size * 2 + b_mat.size * 4
                         + B * G * stride * T * 4)

    out = pl.pallas_call(
        decoder_kernel,
        out_shape=jax.ShapeDtypeStruct((B, G * stride, T), jnp.float32),
        grid=(nB, nG),
        in_specs=[
            pl.BlockSpec((BB, CB, T), lambda bb, gb: (bb, gb, 0)),
            pl.BlockSpec((None, 2 * Mb, CB), lambda bb, gb: (gb, 0, 0)),  # fetched once per gb
            pl.BlockSpec((None, Mb, 1), lambda bb, gb: (gb, 0, 0)),       # fetched once per gb
        ],
        out_specs=pl.BlockSpec((BB, Mb, T), lambda bb, gb: (bb, gb, 0)),
        compiler_params=pltpu.CompilerParams(
            # No accumulation: every (bb, gb) writes a disjoint output block,
            # so both axes are "parallel" (v7x two-TC load balance, review #9).
            dimension_semantics=("parallel", "parallel"),
            vmem_limit_bytes=vmem_limit,
        ),
        cost_estimate=pl.CostEstimate(
            flops=2 * B * G * S * F * T,      # useful FLOPs only (no block-diag zeros)
            transcendentals=0,
            bytes_accessed=bytes_accessed,
        ),
    )(x, w_stack, b_mat)

    # Phase interleave [B, G, stride, T] -> [B, G, T*stride] (layout plumbing).
    # TODO(synk): review #3 — move this interleave into the kernel (8xN XLU
    #             transpose + sublane->lane merge) once the required minor-dim
    #             merge reshape is verified to lower for these tile shapes; it
    #             would remove one full read+write of the output through HBM.
    y = out.reshape(B, G, stride, T)
    y = jnp.transpose(y, (0, 1, 3, 2)).reshape(B, G, T * stride)
    return y[:, :, :L_out]


def ref_conv_transpose1d(x, w, b, G, F, S):
    """Pure numpy reference with PyTorch ConvTranspose1d semantics."""
    x = np.asarray(x, np.float64)
    w = np.asarray(w, np.float64)
    b = np.asarray(b, np.float64)
    B, C, T = x.shape
    stride, pad, opad = S // 2, S // 2, S // 2 - 1
    L = (T - 1) * stride - 2 * pad + S + opad
    y = np.zeros((B, G, L), np.float64)
    for g in range(G):
        xg = x[:, g * F:(g + 1) * F, :]          # [B, F, T]
        wgk = w[g * F:(g + 1) * F, 0, :]         # [F, S]
        for t in range(T):
            for k in range(S):
                o = t * stride - pad + k
                if 0 <= o < L:
                    y[:, g, o] += xg[:, :, t] @ wgk[:, k]
        y[:, g, :] += b[g]
    return y.astype(np.float32)


if __name__ == "__main__":
    # Small deterministic setup consistent with the module's __init__.
    n_sources, freq_res, sample_res = 2, 16, 16   # in_ch = 32, kernel = 16, stride = 8
    B, T = 2, 24                                  # input [B, n_sources*freq_res, T]

    key = jax.random.PRNGKey(0)
    kx, kw, kb = jax.random.split(key, 3)
    x = jax.random.normal(kx, (B, n_sources * freq_res, T), dtype=jnp.float32)
    weight = 0.1 * jax.random.normal(
        kw, (n_sources * freq_res, 1, sample_res), dtype=jnp.float32)
    bias = 0.1 * jax.random.normal(kb, (n_sources,), dtype=jnp.float32)

    y = adaptive_decoder_1d(x, weight, bias,
                            n_sources=n_sources,
                            freq_res=freq_res,
                            sample_res=sample_res)
    y = jax.block_until_ready(y)

    # Check against a direct (scatter-form) transposed-conv reference.
    # Tolerance accounts for bf16 matmul operands (accumulation/epilogue in f32).
    y_ref = ref_conv_transpose1d(np.asarray(x), np.asarray(weight), np.asarray(bias),
                                 n_sources, freq_res, sample_res)
    assert y.shape == y_ref.shape, (y.shape, y_ref.shape)
    np.testing.assert_allclose(np.asarray(y), y_ref, rtol=3e-2, atol=3e-2)

    print("KERNEL_OK")
</pallas_src>

<mosaic_0001>
module attributes {stable_mosaic.version = 11 : i64} {
  func.func @decoder_kernel(%arg0: i32, %arg1: i32, %arg2: memref<2x32x24xf32, #tpu.memory_space<vmem>>, %arg3: memref<1x32x32xbf16, #tpu.memory_space<vmem>>, %arg4: memref<1x16x1xf32, #tpu.memory_space<vmem>>, %arg5: memref<2x16x24xf32, #tpu.memory_space<vmem>>) attributes {dimension_semantics = [#tpu.dimension_semantics<parallel>, #tpu.dimension_semantics<parallel>], iteration_bounds = array<i64: 1, 1>, scalar_prefetch = 0 : i64, scratch_operands = 0 : i64, tpu.core_type = #tpu.core_type<tc>, window_params = [{transform_indices = @transform_0, window_bounds = array<i64: 2, 32, 24>}, {transform_indices = @transform_1, window_bounds = array<i64: 1, 32, 32>}, {transform_indices = @transform_2, window_bounds = array<i64: 1, 16, 1>}, {transform_indices = @transform_3, window_bounds = array<i64: 2, 16, 24>}]} {
    %c0 = arith.constant 0 : index
    %c0_0 = arith.constant 0 : index
    %c0_1 = arith.constant 0 : index
    %0 = vector.load %arg3[%c0, %c0_0, %c0_1] : memref<1x32x32xbf16, #tpu.memory_space<vmem>>, vector<1x32x32xbf16>
    %1 = vector.shape_cast %0 : vector<1x32x32xbf16> to vector<32x32xbf16>
    %c0_2 = arith.constant 0 : index
    %c0_3 = arith.constant 0 : index
    %c0_4 = arith.constant 0 : index
    %2 = vector.load %arg4[%c0_2, %c0_3, %c0_4] : memref<1x16x1xf32, #tpu.memory_space<vmem>>, vector<1x16x1xf32>
    %3 = vector.shape_cast %2 : vector<1x16x1xf32> to vector<16x1xf32>
    %4 = tpu.iota {dimensions = array<i32: 1>} : vector<16x24xi32>
    %c23_i32 = arith.constant 23 : i32
    %5 = vector.broadcast %c23_i32 : i32 to vector<16x24xi32>
    %6 = arith.cmpi slt, %4, %5 : vector<16x24xi32>
    %c0_5 = arith.constant 0 : index
    %c0_6 = arith.constant 0 : index
    %c0_7 = arith.constant 0 : index
    %7 = vector.load %arg2[%c0_5, %c0_6, %c0_7] : memref<2x32x24xf32, #tpu.memory_space<vmem>>, vector<1x32x24xf32>
    %8 = vector.shape_cast %7 : vector<1x32x24xf32> to vector<32x24xf32>
    %9 = arith.truncf %8 : vector<32x24xf32> to vector<32x24xbf16>
    %cst = arith.constant dense<0.000000e+00> : vector<32x24xf32>
    %10 = tpu.matmul %1, %9, %cst {dimension_numbers = #tpu.dot_dimension_numbers<[1], [0], [0], [1], [0, 0, 1, 1], [], []>} : vector<32x32xbf16>, vector<32x24xbf16>, vector<32x24xf32> -> vector<32x24xf32>
    %11 = vector.extract_strided_slice %10 {offsets = [0, 0], sizes = [16, 24], strides = [1, 1]} : vector<32x24xf32> to vector<16x24xf32>
    %12 = vector.extract_strided_slice %10 {offsets = [16, 0], sizes = [16, 24], strides = [1, 1]} : vector<32x24xf32> to vector<16x24xf32>
    %c23_i32_8 = arith.constant 23 : i32
    %13 = tpu.dynamic_rotate %12 by %c23_i32_8 dim 1 : vector<16x24xf32>, i32 -> vector<16x24xf32>
    %cst_9 = arith.constant 0.000000e+00 : f32
    %14 = vector.broadcast %cst_9 : f32 to vector<16x24xf32>
    %15 = arith.select %6, %13, %14 : vector<16x24xi1>, vector<16x24xf32>
    %16 = arith.addf %11, %15 : vector<16x24xf32>
    %17 = vector.broadcast %3 : vector<16x1xf32> to vector<16x24xf32>
    %18 = arith.addf %16, %17 : vector<16x24xf32>
    %c0_10 = arith.constant 0 : index
    %c0_11 = arith.constant 0 : index
    %c0_12 = arith.constant 0 : index
    %19 = vector.load %arg5[%c0_10, %c0_11, %c0_12] : memref<2x16x24xf32, #tpu.memory_space<vmem>>, vector<1x16x24xf32>
    %20 = vector.shape_cast %19 : vector<1x16x24xf32> to vector<16x24xf32>
    %21 = vector.shape_cast %18 : vector<16x24xf32> to vector<1x16x24xf32>
    tpu.vector_store %arg5[%c0_10, %c0_11, %c0_12], %21 {strides = array<i32>} : memref<2x16x24xf32, #tpu.memory_space<vmem>>, vector<1x16x24xf32>,
    %c1 = arith.constant 1 : index
    %c0_13 = arith.constant 0 : index
    %c0_14 = arith.constant 0 : index
    %22 = vector.load %arg2[%c1, %c0_13, %c0_14] : memref<2x32x24xf32, #tpu.memory_space<vmem>>, vector<1x32x24xf32>
    %23 = vector.shape_cast %22 : vector<1x32x24xf32> to vector<32x24xf32>
    %24 = arith.truncf %23 : vector<32x24xf32> to vector<32x24xbf16>
    %cst_15 = arith.constant dense<0.000000e+00> : vector<32x24xf32>
    %25 = tpu.matmul %1, %24, %cst_15 {dimension_numbers = #tpu.dot_dimension_numbers<[1], [0], [0], [1], [0, 0, 1, 1], [], []>} : vector<32x32xbf16>, vector<32x24xbf16>, vector<32x24xf32> -> vector<32x24xf32>
    %26 = vector.extract_strided_slice %25 {offsets = [0, 0], sizes = [16, 24], strides = [1, 1]} : vector<32x24xf32> to vector<16x24xf32>
    %27 = vector.extract_strided_slice %25 {offsets = [16, 0], sizes = [16, 24], strides = [1, 1]} : vector<32x24xf32> to vector<16x24xf32>
    %c23_i32_16 = arith.constant 23 : i32
    %28 = tpu.dynamic_rotate %27 by %c23_i32_16 dim 1 : vector<16x24xf32>, i32 -> vector<16x24xf32>
    %cst_17 = arith.constant 0.000000e+00 : f32
    %29 = vector.broadcast %cst_17 : f32 to vector<16x24xf32>
    %30 = arith.select %6, %28, %29 : vector<16x24xi1>, vector<16x24xf32>
    %31 = arith.addf %26, %30 : vector<16x24xf32>
    %32 = vector.broadcast %3 : vector<16x1xf32> to vector<16x24xf32>
    %33 = arith.addf %31, %32 : vector<16x24xf32>
    %c1_18 = arith.constant 1 : index
    %c0_19 = arith.constant 0 : index
    %c0_20 = arith.constant 0 : index
    %34 = vector.load %arg5[%c1_18, %c0_19, %c0_20] : memref<2x16x24xf32, #tpu.memory_space<vmem>>, vector<1x16x24xf32>
    %35 = vector.shape_cast %34 : vector<1x16x24xf32> to vector<16x24xf32>
    %36 = vector.shape_cast %33 : vector<16x24xf32> to vector<1x16x24xf32>
    tpu.vector_store %arg5[%c1_18, %c0_19, %c0_20], %36 {strides = array<i32>} : memref<2x16x24xf32, #tpu.memory_space<vmem>>, vector<1x16x24xf32>,
    return
  }
  func.func @transform_0(%arg0: i32, %arg1: i32) -> (i32, i32, i32) {
    %c0_i32 = arith.constant 0 : i32
    %c0_i32_0 = arith.constant 0 : i32
    return %arg0, %arg1, %c0_i32 : i32, i32, i32
  }
  func.func @transform_1(%arg0: i32, %arg1: i32) -> (i32, i32, i32) {
    %c0_i32 = arith.constant 0 : i32
    %c0_i32_0 = arith.constant 0 : i32
    %c0_i32_1 = arith.constant 0 : i32
    return %arg1, %c0_i32, %c0_i32_0 : i32, i32, i32
  }
  func.func @transform_2(%arg0: i32, %arg1: i32) -> (i32, i32, i32) {
    %c0_i32 = arith.constant 0 : i32
    %c0_i32_0 = arith.constant 0 : i32
    %c0_i32_1 = arith.constant 0 : i32
    return %arg1, %c0_i32, %c0_i32_0 : i32, i32, i32
  }
  func.func @transform_3(%arg0: i32, %arg1: i32) -> (i32, i32, i32) {
    %c0_i32 = arith.constant 0 : i32
    %c0_i32_0 = arith.constant 0 : i32
    return %arg0, %arg1, %c0_i32 : i32, i32, i32
  }
}

</mosaic_0001>

<bundles_post_ra>
// kernel: tpu_custom_call.1
= control target key start
LH: loop header
LB: loop body
LE: loop exit
PB: predicated region body
PF: predicated region fallthrough
CT: control target
= control target key end

     0   :  { %vm41_vm0 = vcmask 261120   ;;  %s396_s0 = inlined_call_operand.vmem [shape: f32[2,32,24], index: 0, kind: input, shape index: {}]   ;;  %s397_s1 = inlined_call_operand.vmem [shape: bf16[1,32,32], index: 1, kind: input, shape index: {}]   ;;  %s398_s2 = inlined_call_operand.vmem [shape: f32[1,16,1], index: 2, kind: input, shape index: {}]   ;;  %s399_s3 = inlined_call_operand.hbm [shape: f32[2,16,24], index: 3, kind: output, shape index: {}]  }
   0x1   :  { %v25_v0 = vld [vmem:[%s396_s0] sm:$0xff]  ;;  %v26_v1 = vld [vmem:[%s396_s0 + $0x8] sm:$0xff]  ;;  %v27_v5 = vld [vmem:[%s396_s0 + $0x10] sm:$0xff] }
   0x2   :  { %v242_v2 = vld [vmem:[%s396_s0 + $0x20] sm:$0xff]  ;;  %v29_v3 = vpack.c.bf16 %v26_v1, %v25_v0  ;;  %v243_v4 = vld [vmem:[%s396_s0 + $0x28] sm:$0xff]  ;;  %v28_v6 = vld [vmem:[%s396_s0 + $0x18] sm:$0xff] }
   0x3   :  { %v142_v7 = vpack.c.bf16 %v243_v4, %v242_v2  ;;  %v30_v8 = vpack.c.bf16 %v28_v6, %v27_v5  ;;  %v244_v9 = vld [vmem:[%s396_s0 + $0x30] sm:$0xff]  ;;  %v245_v10 = vld [vmem:[%s396_s0 + $0x38] sm:$0xff]  ;;  %v280_v12 = vld [vmem:[%s397_s1] sm:$0xff]  }
   0x4   :  { %256 = vmatprep.subr.bf16.mxu0 %v29_v3  ;;  %v143_v11 = vpack.c.bf16 %v245_v10, %v244_v9 }
   0x5   :  { %264 = vmatprep.subr.bf16.mxu1 %v142_v7  ;;  %257 = vmatpush3.bf16.msra.mxu0 %v29_v3 }
   0x6   :  { %8 = vsyncpa [#allocation3], 0  ;;  %265 = vmatpush3.bf16.msra.mxu1 %v142_v7  ;;  %258 = vmatprep.subr.bf16.mxu0 %v30_v8  ;;  %v281_v13 = vld [vmem:[%s397_s1 + $0x8] sm:$0xff]   ;;  %v306_v14 = vmov 0   ;;  %s307_s0 = smov 24   ;;  %vm97_vm1 = vcmask 1047744   ;;  %v22_v41 = vlaneseq }
   0x7   :  { %266 = vmatprep.subr.bf16.mxu1 %v143_v11  ;;  %260 = vmatprep.mubr.msk.bf16.mxu0 %vm41_vm0, %v280_v12  ;;  %v20_v30 = vld [vmem:[%s398_s2] sm:$0xff]  ;;  %v21_v32 = vld [vmem:[%s398_s2 + $0x8] sm:$0xff]  ;;  %s308_s8 = smov 127   ;;  %vm134_vm3 = vcmask 195584   ;;  %s309_s2 = smov [#allocation2]  }
   0x8   :  { %268 = vmatprep.mubr.msk.bf16.mxu1 %vm41_vm0, %v280_v12  ;;  %279 = vset.pattern.permute.xlu1 %v306_v14  ;;  %v23_v43 = vand.u32 127, %v22_v41  ;;  %s227_s9 = sshll.u32 %s309_s2, 4  ;;  %s228_s9 = int_to_ptr.vmem [resolvable:$true] %s227_s9 }
   0x9   :  { %259 = vmatpush3.bf16.msra.mxu0 %v30_v8  ;;  %278 = vset.pattern.permute.xlu0 %v306_v14  ;;  %s282_s10 = scalar_lea.vmem %s228_s9, 512  ;;  %p287_p1 = scmp.lt.s32.totalorder %s228_s9, %s228_s9 }
   0xa   :  { %267 = vmatpush3.bf16.msra.mxu1 %v143_v11  ;;  %vm24_vm2 = vcmp.lt.s32.totalorder %v23_v43, 23  ;;  %p283_p0 = scmp.ne.s32.totalorder %s228_s9, %s282_s10  ;;  %p288_p2 = scmp.lt.s32.totalorder %s282_s10, %s282_s10 }
   0xc   :  { %261 = vmatmul.mubr.msk.bf16.vlgmr.msra.gmra.mrb[0].mxu0 %vm41_vm0, %v281_v13  ;;  %p289_p3 = por %p288_p2, %p287_p1 }
   0xd   :  { %269 = vmatmul.mubr.msk.bf16.vlgmr.msra.gmra.mrb[0].mxu1 %vm41_vm0, %v281_v13 }
   0xe   :  { %p290_p4 = pnand %p289_p3, %p283_p0 }
  0xdf   :  { %v262_v15 = vpop.f32.mrb[0].mxu0 }
  0xe0   :  { %v270_v16 = vpop.f32.mrb[0].mxu1  ;;  %98 = vrot.lane.b32.xlu0 %v262_v15, %s307_s0  ;;  %v82_v17 = vpop.f32.mrb[1].mxu0 }
  0xe1   :  { %193 = vrot.lane.b32.xlu1 %v270_v16, %s307_s0  ;;  %v263_v18 = vpop.f32.mrb[2].mxu0  ;;  %v178_v19 = vpop.f32.mrb[1].mxu1 }
  0xe2   :  { %v85_v20 = vpop.f32.mrb[3].mxu0  ;;  %v271_v21 = vpop.f32.mrb[2].mxu1 }
  0xe3   :  { %v181_v22 = vpop.f32.mrb[3].mxu1 }
  0xe4   :  { %101 = vrot.lane.b32.xlu0 %v263_v18, %s307_s0 }
  0xe5   :  { %196 = vrot.lane.b32.xlu1 %v271_v21, %s307_s0 }
 0x152   :  { %v99_v23 = vpop.permute.xlu0 %98 }
 0x153   :  { %v194_v24 = vpop.permute.xlu1 %193  ;;  %v100_v25 = vsel %vm97_vm1, %v99_v23, %v262_v15 }
 0x154   :  { %104 = vrot.lane.b32.xlu0 %v100_v25, %s307_s0  ;;  %v195_v27 = vsel %vm97_vm1, %v194_v24, %v270_v16 }
 0x156   :  { %v102_v26 = vpop.permute.xlu0 %101 }
 0x157   :  { %v103_v28 = vsel %vm97_vm1, %v102_v26, %v263_v18  ;;  %v197_v29 = vpop.permute.xlu1 %196 }
 0x158   :  { %199 = vrot.lane.b32.xlu0 %v195_v27, %s307_s0  ;;  %106 = vrot.lane.b32.xlu1 %v103_v28, %s307_s0  ;;  %v198_v31 = vsel %vm97_vm1, %v197_v29, %v271_v21 }
 0x15c   :  { %201 = vrot.lane.b32.xlu1 %v198_v31, %s307_s0  ;;  %124 = vperm.xlu0 %278, %v20_v30  }
 0x160   :  { %129 = vperm.xlu1 %279, %v21_v32  }
 0x1c6   :  { %v105_v33 = vpop.permute.xlu0 %104 }
 0x1c7   :  { %v108_v34 = vsel %vm97_vm1, %v105_v33, %v262_v15 }
 0x1c8   :  { %112 = vrot.lane.b32.xlu1 %v108_v34, %s308_s8 }
 0x1ca   :  { %v107_v35 = vpop.permute.xlu1 %106  ;;  %v200_v36 = vpop.permute.xlu0 %199 }
 0x1cb   :  { %v109_v37 = vsel %vm97_vm1, %v107_v35, %v263_v18  ;;  %v203_v38 = vsel %vm97_vm1, %v200_v36, %v270_v16 }
 0x1cc   :  { %114 = vrot.lane.b32.xlu0 %v109_v37, %s308_s8  ;;  %207 = vrot.lane.b32.xlu1 %v203_v38, %s308_s8 }
 0x1ce   :  { %v202_v39 = vpop.permute.xlu1 %201 }
 0x1cf   :  { %v204_v40 = vsel %vm97_vm1, %v202_v39, %v271_v21 }
 0x1d0   :  { %209 = vrot.lane.b32.xlu0 %v204_v40, %s308_s8 }
 0x1db   :  { %v125_v44 = vpop.permute.xlu0 %124 }
 0x1df   :  { %v130_v42 = vpop.permute.xlu1 %129 }
 0x23a   :  { %v113_v45 = vpop.permute.xlu1 %112 }
 0x23b   :  { %v118_v46 = vsel %vm24_vm2, %v113_v45, 0.0 }
 0x23c   :  { %v120_v47 = vadd.f32 %v118_v46, %v82_v17 }
 0x23e   :  { %v132_v48 = vadd.f32 %v125_v44, %v120_v47  ;;  %v208_v49 = vpop.permute.xlu1 %207  ;;  %v115_v50 = vpop.permute.xlu0 %114 }
 0x23f   :  { %v213_v51 = vsel %vm24_vm2, %v208_v49, 0.0  ;;  %v119_v52 = vsel %vm24_vm2, %v115_v50, 0.0 }
 0x240   :  { %135 = vst.msk [vmem:[#allocation2] sm:$0xff] %vm134_vm3, %v132_v48  ;;  %v215_v53 = vadd.f32 %v213_v51, %v178_v19  ;;  %v121_v54 = vadd.f32 %v119_v52, %v85_v20 }
 0x242   :  { %v217_v55 = vadd.f32 %v215_v53, %v125_v44  ;;  %v133_v56 = vadd.f32 %v130_v42, %v121_v54  ;;  %v210_v57 = vpop.permute.xlu0 %209 }
 0x243   :  { %v214_v58 = vsel %vm24_vm2, %v210_v57, 0.0 }
 0x244   :  { %220 = vst.msk [vmem:[#allocation2 + $0x10] sm:$0xff] %vm134_vm3, %v217_v55  ;;  %136 = vst.msk [vmem:[#allocation2 + $0x8] sm:$0xff] %vm134_vm3, %v133_v56  ;;  %v216_v59 = vadd.f32 %v214_v58, %v181_v22 }
 0x246   :  { %v218_v60 = vadd.f32 %v216_v59, %v130_v42 }
 0x248   :  { %221 = vst.msk [vmem:[#allocation2 + $0x18] sm:$0xff] %vm134_vm3, %v218_v60 }
 0x249   :  { %293 = shalt.err (!%p290_p4)
}
 0x24a   :  { %s294_s13 = scalar_lea.hbm %s399_s3, 512 }
 0x24b   :  { %p295_p5 = scmp.ne.s32.totalorder %s399_s3, %s294_s13  ;;  %p298_p6 = scmp.lt.u32.totalorder %s294_s13, %s399_s3 }
 0x24d   :  { %p300_p7 = pnand %p298_p6, %p295_p5 }
 0x24f   :  { %303 = shalt.err (!%p300_p7)
}
 0x250   :  { %s310_s18 = smov 128   ;;  %s311_s19 = smov 8  }
 0x251   :  { %233 = dma.vmem_to_hbm [thread:$0]  %s228_s9, 512, %s399_s3, [#allocation3], %s310_s18, %s310_s18, %s311_s19  }
 0x252   :  { %304 = dma.done.wait [#allocation3], 512  }
 0x253   :  { %305 = vsyncadd [#allocation3], 4294966784 }
 0x254   :  { %237 = vsyncpa [#allocation3], 1 }

</bundles_post_ra>
